<compile_context>
chip_gen: v5e
topology: v5e:2x2
jax: 0.10.0
libtpu: 0.0.40
codegen_flags: <defaults>
</compile_context>

<pallas_src>
import functools

import jax
import jax.numpy as jnp
import numpy as np
from jax.experimental import pallas as pl
from jax.experimental.pallas import tpu as pltpu

X_SIZE = 16     # x_size
H_SIZE = 32     # h_size
K_CHILD = 2     # max in-degree of the synthetic cascade trees (binary)


def _full_spec(shape):
    nd = len(shape)
    return pl.BlockSpec(shape, lambda l, _nd=nd: (0,) * _nd)


# ----------------------------------------------------------------------------
# Fused kernel: all topological frontiers of TreeAggregatorCell + graph readout
# ----------------------------------------------------------------------------
def tree_agg_kernel(x_ref, gmat_ref, cmask_ref, level_ref, wread_ref,
                    wx_ref, bx_ref, uh_ref, uf_ref, wa_ref, ba_ref,
                    out_ref, hc_ref, xw_ref):
    f32 = jnp.float32
    H = H_SIZE
    N = x_ref.shape[0]                 # padded node count (sublane-aligned)
    K = gmat_ref.shape[0] // N
    lev = pl.program_id(0)

    # Level-0 init: zero persistent [h|c] state and cache the level-invariant
    # x-side pre-activations  x @ [Wi|Wo|Wu|Wf] + [bi|bo|bu|bf]  (N, 4H).
    @pl.when(lev == 0)
    def _():
        hc_ref[...] = jnp.zeros_like(hc_ref)
        xw_ref[...] = (jnp.dot(x_ref[...], wx_ref[...], preferred_element_type=f32)
                       + bx_ref[...])

    xw = xw_ref[...]                                                    # (N, 4H)
    hc = hc_ref[...]                                                    # (N, 2H) = [h|c]

    # In-kernel child gather: one matmul against the static one-hot gather matrix
    # (child_valid baked in) pulls both the h and c mailboxes at once.
    child_hc = jnp.dot(gmat_ref[...], hc, preferred_element_type=f32)   # (K*N, 2H)
    child_h_all = child_hc[:, :H]                                       # (K*N, H)

    # Forget-gate pre-activation for every child in one batched matmul.
    fpre_all = jnp.dot(child_h_all, uf_ref[...], preferred_element_type=f32)  # (K*N, H)

    # Attention score: VPU multiply + lane reduce (avoids a 1-column MXU matmul).
    scores_all = (jnp.sum(child_h_all * wa_ref[...], axis=-1, keepdims=True)
                  + ba_ref[...])                                        # (K*N, 1)
    cmask_all = cmask_ref[...]                                          # (K*N, 1)
    scores_all = jnp.where(cmask_all > 0.0, scores_all, -1e30)

    wfx = xw[:, 3 * H:]                                                 # (N, H)  W_f x + b_f

    # Unstack the K child slots along tile-aligned sublane slices (K is tiny & static).
    ch_h, ch_c, sc, ms, fg = [], [], [], [], []
    for k in range(K):
        r = slice(k * N, (k + 1) * N)
        ch_h.append(child_hc[r, :H])
        ch_c.append(child_hc[r, H:])
        sc.append(scores_all[r])
        ms.append(cmask_all[r])
        fg.append(jax.nn.sigmoid(fpre_all[r] + wfx))

    # reduce_func: forget-gated child-cell sum + masked attention softmax.
    c_red = sum(fg[k] * ch_c[k] for k in range(K))                      # (N, H)
    smax = functools.reduce(jnp.maximum, sc)
    e = [jnp.exp(sc[k] - smax) * ms[k] for k in range(K)]
    denom = sum(e)
    nch = sum(ms)
    inv = jnp.where(nch > 0.0, 1.0 / jnp.maximum(denom, 1e-30), 0.0)
    h_tild = sum(e[k] * ch_h[k] for k in range(K)) * inv                # 0 for leaves

    # apply_node_func: x-side cached, h-side one 96-wide matmul.
    iou = xw[:, :3 * H] + jnp.dot(h_tild, uh_ref[...], preferred_element_type=f32)
    i_g = jax.nn.sigmoid(iou[:, :H])
    o_g = jax.nn.sigmoid(iou[:, H:2 * H])
    u_g = jnp.tanh(iou[:, 2 * H:])
    c_new = i_g * u_g + c_red
    h_new = o_g * jnp.tanh(c_new)

    # Only nodes on the current topological frontier update their state; a single
    # concatenated full-tile store keeps the write unmasked along lanes.
    on_front = level_ref[...] == lev                                    # (N, 1) bool
    hc_upd = jnp.where(on_front, jnp.concatenate([h_new, c_new], axis=1), hc)
    hc_ref[...] = hc_upd

    # Fused readout on the final frontier, straight from the VMEM-resident state:
    #   out = ((seg * mask^T) / (seg @ mask)) @ h
    @pl.when(lev == pl.num_programs(0) - 1)
    def _():
        out_ref[...] = jnp.dot(wread_ref[...], hc_upd[:, :H],
                               preferred_element_type=f32)


def tree_aggregator_forward(x, child_idx, child_valid, node_level, mask, seg, params):
    """Pallas forward of TreeAggregator.forward (eval semantics)."""
    (W_iou, U_iou, b_iou, U_f, W_f, b_f, W_a, b_a) = params
    N, X = x.shape
    H = H_SIZE
    K = int(child_idx.shape[0])
    G = int(seg.shape[0])

    child_idx = np.asarray(child_idx)
    child_valid = np.asarray(child_valid, np.float32)
    node_level = np.asarray(node_level)
    mask_np = np.asarray(mask, np.float32)
    seg_np = np.asarray(seg, np.float32)

    n_levels = int(node_level.max()) + 1
    Np = ((N + 7) // 8) * 8                       # pad node axis to sublane tile (8)

    # ---- host-side graph glue (static structure; replaces dgl mailbox gather) ----
    gmat = np.zeros((K * Np, Np), np.float32)     # one-hot gather, child_valid baked in
    cmask = np.zeros((K * Np, 1), np.float32)
    for k in range(K):
        gmat[k * Np + np.arange(N), child_idx[k]] = child_valid[k]
        cmask[k * Np:k * Np + N, 0] = child_valid[k]
    level_pad = np.full((Np, 1), -1, np.int32)    # padded nodes never on any frontier
    level_pad[:N, 0] = node_level
    # readout weights: (seg * mask^T) / (seg @ mask)  (no clamp -- matches reference)
    den = seg_np @ mask_np                        # (G, 1)
    wread = np.zeros((G, Np), np.float32)
    wread[:, :N] = (seg_np * mask_np[:, 0][None, :]) / den

    x_pad = jnp.zeros((Np, X), jnp.float32).at[:N].set(x)

    # Concatenated lane-dense weights.
    wx_cat = jnp.concatenate([W_iou, W_f], axis=1)            # (X, 4H) = (16, 128)
    bx_cat = jnp.concatenate([b_iou, b_f], axis=1)            # (1, 4H)
    wa_row = W_a.T                                            # (1, H)

    ins = (x_pad, jnp.asarray(gmat), jnp.asarray(cmask), jnp.asarray(level_pad),
           jnp.asarray(wread), wx_cat, bx_cat, U_iou, U_f, wa_row, b_a)

    out = pl.pallas_call(
        tree_agg_kernel,
        out_shape=jax.ShapeDtypeStruct((G, H), jnp.float32),
        grid_spec=pltpu.PrefetchScalarGridSpec(
            num_scalar_prefetch=0,
            grid=(n_levels,),
            in_specs=[_full_spec(a.shape) for a in ins],
            out_specs=_full_spec((G, H)),
            scratch_shapes=[pltpu.VMEM((Np, 2 * H), jnp.float32),    # persistent [h|c]
                            pltpu.VMEM((Np, 4 * H), jnp.float32)]),  # cached x-side pre-acts
        compiler_params=pltpu.CompilerParams(dimension_semantics=("arbitrary",)),
    )(*ins)
    # TODO(synk): nn.Dropout(p=0.1) is identity in eval mode; train-mode RNG dropout not implemented.
    return out


def reference_forward(x, child_idx, child_valid, node_level, mask, seg, params):
    (W_iou, U_iou, b_iou, U_f, W_f, b_f, W_a, b_a) = params
    hp = jax.lax.Precision.HIGHEST
    dot = lambda a, b: jnp.dot(a, b, precision=hp)
    N = x.shape[0]
    H = H_SIZE
    K = child_idx.shape[0]
    h = jnp.zeros((N, H), jnp.float32)
    c = jnp.zeros((N, H), jnp.float32)
    n_levels = int(np.max(np.asarray(node_level))) + 1
    node_level = jnp.asarray(node_level)
    for lev in range(n_levels):
        lvl = (node_level == lev).astype(jnp.float32)[:, None]
        hm = [jnp.take(h, child_idx[k], axis=0) * child_valid[k][:, None] for k in range(K)]
        cm = [jnp.take(c, child_idx[k], axis=0) * child_valid[k][:, None] for k in range(K)]
        msk = [child_valid[k][:, None] for k in range(K)]
        wfx = dot(x, W_f) + b_f
        scores = [jnp.where(msk[k] > 0, dot(hm[k], W_a) + b_a, -1e30) for k in range(K)]
        smax = functools.reduce(jnp.maximum, scores)
        e = [jnp.exp(scores[k] - smax) * msk[k] for k in range(K)]
        denom = sum(e)
        nch = sum(msk)
        inv = jnp.where(nch > 0, 1.0 / jnp.maximum(denom, 1e-30), 0.0)
        h_tild = sum(e[k] * hm[k] for k in range(K)) * inv
        c_red = sum(jax.nn.sigmoid(dot(hm[k], U_f) + wfx) * cm[k] for k in range(K))
        iou = dot(x, W_iou) + dot(h_tild, U_iou) + b_iou
        i_g = jax.nn.sigmoid(iou[:, :H])
        o_g = jax.nn.sigmoid(iou[:, H:2 * H])
        u_g = jnp.tanh(iou[:, 2 * H:])
        c_new = i_g * u_g + c_red
        h_new = o_g * jnp.tanh(c_new)
        h = jnp.where(lvl > 0, h_new, h)
        c = jnp.where(lvl > 0, c_new, c)
    return dot(seg, mask * h) / dot(seg, mask)


if __name__ == "__main__":
    # Two binary cascade trees of 7 nodes each (edges point child -> parent):
    #   root 0 <- {1, 2};  1 <- {3, 4};  2 <- {5, 6}   (nodes 7..13 mirror for graph 1)
    n_per_graph, n_graphs = 7, 2
    N = n_per_graph * n_graphs
    children = {0: [1, 2], 1: [3, 4], 2: [5, 6]}
    levels = {0: 2, 1: 1, 2: 1, 3: 0, 4: 0, 5: 0, 6: 0}

    child_idx = np.zeros((K_CHILD, N), np.int32)
    child_valid = np.zeros((K_CHILD, N), np.float32)
    node_level = np.zeros((N,), np.int32)
    for g in range(n_graphs):
        off = g * n_per_graph
        for p, kids in children.items():
            for k, ch in enumerate(kids):
                child_idx[k, p + off] = ch + off
                child_valid[k, p + off] = 1.0
        for n, lv in levels.items():
            node_level[n + off] = lv

    seg = np.zeros((n_graphs, N), np.float32)
    for g in range(n_graphs):
        seg[g, g * n_per_graph:(g + 1) * n_per_graph] = 1.0
    mask = (node_level == 0).astype(np.float32)[:, None]     # 'mask' ndata: leaf nodes

    key = jax.random.PRNGKey(0)
    ks = jax.random.split(key, 8)

    def init(k, shape):
        return jax.random.normal(k, shape, jnp.float32) * 0.1

    H = H_SIZE
    W_iou = init(ks[0], (X_SIZE, 3 * H))         # W_iou.weight^T  (no bias)
    U_iou = init(ks[1], (H, 3 * H))              # U_iou.weight^T  (no bias)
    b_iou = jnp.zeros((1, 3 * H), jnp.float32)
    U_f = init(ks[2], (H, H))
    W_f = init(ks[3], (X_SIZE, H))
    b_f = jnp.zeros((1, H), jnp.float32)
    W_a = init(ks[4], (H, 1))                    # attention.W.weight^T
    b_a = init(ks[5], (1, 1))                    # attention.W.bias

    params = (W_iou, U_iou, b_iou, U_f, W_f, b_f, W_a, b_a)
    x = jax.random.normal(ks[6], (N, X_SIZE), jnp.float32)   # node features g.ndata['x']

    out = tree_aggregator_forward(x, child_idx, child_valid, node_level, mask, seg, params)
    out = jax.block_until_ready(out)

    ref = reference_forward(x, child_idx, child_valid, node_level, mask, seg, params)
    ref = jax.block_until_ready(ref)

    assert out.shape == (n_graphs, H_SIZE)
    np.testing.assert_allclose(np.asarray(out), np.asarray(ref), rtol=2e-3, atol=2e-3)
    print("KERNEL_OK")
</pallas_src>

<mosaic_0001>
module attributes {stable_mosaic.version = 11 : i64} {
  func.func @tree_agg_kernel(%arg0: i32, %arg1: memref<16x16xf32, #tpu.memory_space<vmem>>, %arg2: memref<32x16xf32, #tpu.memory_space<vmem>>, %arg3: memref<32x1xf32, #tpu.memory_space<vmem>>, %arg4: memref<16x1xi32, #tpu.memory_space<vmem>>, %arg5: memref<2x16xf32, #tpu.memory_space<vmem>>, %arg6: memref<16x128xf32, #tpu.memory_space<vmem>>, %arg7: memref<1x128xf32, #tpu.memory_space<vmem>>, %arg8: memref<32x96xf32, #tpu.memory_space<vmem>>, %arg9: memref<32x32xf32, #tpu.memory_space<vmem>>, %arg10: memref<1x32xf32, #tpu.memory_space<vmem>>, %arg11: memref<1x1xf32, #tpu.memory_space<vmem>>, %arg12: memref<2x32xf32, #tpu.memory_space<vmem>>, %arg13: memref<16x64xf32, #tpu.memory_space<vmem>>, %arg14: memref<16x128xf32, #tpu.memory_space<vmem>>) attributes {dimension_semantics = [#tpu.dimension_semantics<arbitrary>], iteration_bounds = array<i64: 3>, scalar_prefetch = 0 : i64, scratch_operands = 2 : i64, tpu.core_type = #tpu.core_type<tc>, window_params = [{pipeline_mode = #tpu.pipeline_mode<synchronous>, transform_indices = @transform_0, window_bounds = array<i64: 16, 16>}, {pipeline_mode = #tpu.pipeline_mode<synchronous>, transform_indices = @transform_1, window_bounds = array<i64: 32, 16>}, {pipeline_mode = #tpu.pipeline_mode<synchronous>, transform_indices = @transform_2, window_bounds = array<i64: 32, 1>}, {pipeline_mode = #tpu.pipeline_mode<synchronous>, transform_indices = @transform_3, window_bounds = array<i64: 16, 1>}, {pipeline_mode = #tpu.pipeline_mode<synchronous>, transform_indices = @transform_4, window_bounds = array<i64: 2, 16>}, {pipeline_mode = #tpu.pipeline_mode<synchronous>, transform_indices = @transform_5, window_bounds = array<i64: 16, 128>}, {pipeline_mode = #tpu.pipeline_mode<synchronous>, transform_indices = @transform_6, window_bounds = array<i64: 1, 128>}, {pipeline_mode = #tpu.pipeline_mode<synchronous>, transform_indices = @transform_7, window_bounds = array<i64: 32, 96>}, {pipeline_mode = #tpu.pipeline_mode<synchronous>, transform_indices = @transform_8, window_bounds = array<i64: 32, 32>}, {pipeline_mode = #tpu.pipeline_mode<synchronous>, transform_indices = @transform_9, window_bounds = array<i64: 1, 32>}, {pipeline_mode = #tpu.pipeline_mode<synchronous>, transform_indices = @transform_10, window_bounds = array<i64: 1, 1>}, {pipeline_mode = #tpu.pipeline_mode<synchronous>, transform_indices = @transform_11, window_bounds = array<i64: 2, 32>}]} {
    %c0_i32 = arith.constant 0 : i32
    %0 = arith.cmpi eq, %arg0, %c0_i32 : i32
    %1 = arith.extui %0 : i1 to i32
    %c0_i32_0 = arith.constant 0 : i32
    %2 = arith.cmpi ne, %1, %c0_i32_0 : i32
    scf.if %2 {
      %cst_38 = arith.constant 0.000000e+00 : f32
      %114 = vector.broadcast %cst_38 : f32 to vector<16x64xf32>
      %c0_39 = arith.constant 0 : index
      %c0_40 = arith.constant 0 : index
      %115 = vector.load %arg13[%c0_39, %c0_40] : memref<16x64xf32, #tpu.memory_space<vmem>>, vector<16x64xf32>
      tpu.vector_store %arg13[%c0_39, %c0_40], %114 {strides = array<i32>} : memref<16x64xf32, #tpu.memory_space<vmem>>, vector<16x64xf32>,
      %c0_41 = arith.constant 0 : index
      %c0_42 = arith.constant 0 : index
      %116 = vector.load %arg1[%c0_41, %c0_42] : memref<16x16xf32, #tpu.memory_space<vmem>>, vector<16x16xf32>
      %c0_43 = arith.constant 0 : index
      %c0_44 = arith.constant 0 : index
      %117 = vector.load %arg6[%c0_43, %c0_44] : memref<16x128xf32, #tpu.memory_space<vmem>>, vector<16x128xf32>
      %cst_45 = arith.constant dense<0.000000e+00> : vector<16x128xf32>
      %118 = tpu.matmul %116, %117, %cst_45 {dimension_numbers = #tpu.dot_dimension_numbers<[1], [0], [0], [1], [0, 0, 1, 1], [], []>} : vector<16x16xf32>, vector<16x128xf32>, vector<16x128xf32> -> vector<16x128xf32>
      %c0_46 = arith.constant 0 : index
      %c0_47 = arith.constant 0 : index
      %119 = vector.load %arg7[%c0_46, %c0_47] : memref<1x128xf32, #tpu.memory_space<vmem>>, vector<1x128xf32>
      %120 = vector.broadcast %119 : vector<1x128xf32> to vector<16x128xf32>
      %121 = arith.addf %118, %120 : vector<16x128xf32>
      %c0_48 = arith.constant 0 : index
      %c0_49 = arith.constant 0 : index
      %122 = vector.load %arg14[%c0_48, %c0_49] : memref<16x128xf32, #tpu.memory_space<vmem>>, vector<16x128xf32>
      tpu.vector_store %arg14[%c0_48, %c0_49], %121 {strides = array<i32>} : memref<16x128xf32, #tpu.memory_space<vmem>>, vector<16x128xf32>,
    } else {
    }
    %c0 = arith.constant 0 : index
    %c0_1 = arith.constant 0 : index
    %3 = vector.load %arg14[%c0, %c0_1] : memref<16x128xf32, #tpu.memory_space<vmem>>, vector<16x128xf32>
    %c0_2 = arith.constant 0 : index
    %c0_3 = arith.constant 0 : index
    %4 = vector.load %arg13[%c0_2, %c0_3] : memref<16x64xf32, #tpu.memory_space<vmem>>, vector<16x64xf32>
    %c0_4 = arith.constant 0 : index
    %c0_5 = arith.constant 0 : index
    %5 = vector.load %arg2[%c0_4, %c0_5] : memref<32x16xf32, #tpu.memory_space<vmem>>, vector<32x16xf32>
    %cst = arith.constant dense<0.000000e+00> : vector<32x64xf32>
    %6 = tpu.matmul %5, %4, %cst {dimension_numbers = #tpu.dot_dimension_numbers<[1], [0], [0], [1], [0, 0, 1, 1], [], []>} : vector<32x16xf32>, vector<16x64xf32>, vector<32x64xf32> -> vector<32x64xf32>
    %7 = vector.extract_strided_slice %6 {offsets = [0, 0], sizes = [32, 32], strides = [1, 1]} : vector<32x64xf32> to vector<32x32xf32>
    %c0_6 = arith.constant 0 : index
    %c0_7 = arith.constant 0 : index
    %8 = vector.load %arg9[%c0_6, %c0_7] : memref<32x32xf32, #tpu.memory_space<vmem>>, vector<32x32xf32>
    %cst_8 = arith.constant dense<0.000000e+00> : vector<32x32xf32>
    %9 = tpu.matmul %7, %8, %cst_8 {dimension_numbers = #tpu.dot_dimension_numbers<[1], [0], [0], [1], [0, 0, 1, 1], [], []>} : vector<32x32xf32>, vector<32x32xf32>, vector<32x32xf32> -> vector<32x32xf32>
    %c0_9 = arith.constant 0 : index
    %c0_10 = arith.constant 0 : index
    %10 = vector.load %arg10[%c0_9, %c0_10] : memref<1x32xf32, #tpu.memory_space<vmem>>, vector<1x32xf32>
    %11 = vector.broadcast %10 : vector<1x32xf32> to vector<32x32xf32>
    %12 = arith.mulf %7, %11 : vector<32x32xf32>
    %cst_11 = arith.constant dense<0.000000e+00> : vector<32xf32>
    %13 = vector.multi_reduction <add>, %12, %cst_11 [1] : vector<32x32xf32> to vector<32xf32>
    %14 = vector.shape_cast %13 : vector<32xf32> to vector<32x1xf32>
    %c0_12 = arith.constant 0 : index
    %c0_13 = arith.constant 0 : index
    %15 = vector.load %arg11[%c0_12, %c0_13] : memref<1x1xf32, #tpu.memory_space<vmem>>, vector<1x1xf32>
    %16 = vector.broadcast %15 : vector<1x1xf32> to vector<32x1xf32>
    %17 = arith.addf %14, %16 : vector<32x1xf32>
    %c0_14 = arith.constant 0 : index
    %c0_15 = arith.constant 0 : index
    %18 = vector.load %arg3[%c0_14, %c0_15] : memref<32x1xf32, #tpu.memory_space<vmem>>, vector<32x1xf32>
    %cst_16 = arith.constant 0.000000e+00 : f32
    %19 = vector.broadcast %cst_16 : f32 to vector<32x1xf32>
    %20 = arith.cmpf ogt, %18, %19 : vector<32x1xf32>
    %cst_17 = arith.constant -1.000000e+30 : f32
    %21 = vector.broadcast %cst_17 : f32 to vector<32x1xf32>
    %22 = arith.select %20, %17, %21 : vector<32x1xi1>, vector<32x1xf32>
    %23 = vector.extract_strided_slice %3 {offsets = [0, 96], sizes = [16, 32], strides = [1, 1]} : vector<16x128xf32> to vector<16x32xf32>
    %24 = vector.extract_strided_slice %6 {offsets = [0, 0], sizes = [16, 32], strides = [1, 1]} : vector<32x64xf32> to vector<16x32xf32>
    %25 = vector.extract_strided_slice %6 {offsets = [0, 32], sizes = [16, 32], strides = [1, 1]} : vector<32x64xf32> to vector<16x32xf32>
    %26 = vector.extract_strided_slice %22 {offsets = [0, 0], sizes = [16, 1], strides = [1, 1]} : vector<32x1xf32> to vector<16x1xf32>
    %27 = vector.extract_strided_slice %18 {offsets = [0, 0], sizes = [16, 1], strides = [1, 1]} : vector<32x1xf32> to vector<16x1xf32>
    %28 = vector.extract_strided_slice %9 {offsets = [0, 0], sizes = [16, 32], strides = [1, 1]} : vector<32x32xf32> to vector<16x32xf32>
    %29 = arith.addf %28, %23 : vector<16x32xf32>
    %30 = arith.negf %29 : vector<16x32xf32>
    %31 = math.exp %30 : vector<16x32xf32>
    %cst_18 = arith.constant 1.000000e+00 : f32
    %32 = vector.broadcast %cst_18 : f32 to vector<16x32xf32>
    %33 = arith.addf %32, %31 : vector<16x32xf32>
    %34 = arith.divf %32, %33 : vector<16x32xf32>
    %35 = vector.extract_strided_slice %6 {offsets = [16, 0], sizes = [16, 32], strides = [1, 1]} : vector<32x64xf32> to vector<16x32xf32>
    %36 = vector.extract_strided_slice %6 {offsets = [16, 32], sizes = [16, 32], strides = [1, 1]} : vector<32x64xf32> to vector<16x32xf32>
    %37 = vector.extract_strided_slice %22 {offsets = [16, 0], sizes = [16, 1], strides = [1, 1]} : vector<32x1xf32> to vector<16x1xf32>
    %38 = vector.extract_strided_slice %18 {offsets = [16, 0], sizes = [16, 1], strides = [1, 1]} : vector<32x1xf32> to vector<16x1xf32>
    %39 = vector.extract_strided_slice %9 {offsets = [16, 0], sizes = [16, 32], strides = [1, 1]} : vector<32x32xf32> to vector<16x32xf32>
    %40 = arith.addf %39, %23 : vector<16x32xf32>
    %41 = arith.negf %40 : vector<16x32xf32>
    %42 = math.exp %41 : vector<16x32xf32>
    %cst_19 = arith.constant 1.000000e+00 : f32
    %43 = vector.broadcast %cst_19 : f32 to vector<16x32xf32>
    %44 = arith.addf %43, %42 : vector<16x32xf32>
    %45 = arith.divf %43, %44 : vector<16x32xf32>
    %46 = arith.mulf %34, %25 : vector<16x32xf32>
    %cst_20 = arith.constant 0.000000e+00 : f32
    %47 = vector.broadcast %cst_20 : f32 to vector<16x32xf32>
    %48 = arith.addf %47, %46 : vector<16x32xf32>
    %49 = arith.mulf %45, %36 : vector<16x32xf32>
    %50 = arith.addf %48, %49 : vector<16x32xf32>
    %51 = arith.maximumf %26, %37 : vector<16x1xf32>
    %52 = arith.subf %26, %51 : vector<16x1xf32>
    %53 = math.exp %52 : vector<16x1xf32>
    %54 = arith.mulf %53, %27 : vector<16x1xf32>
    %55 = arith.subf %37, %51 : vector<16x1xf32>
    %56 = math.exp %55 : vector<16x1xf32>
    %57 = arith.mulf %56, %38 : vector<16x1xf32>
    %cst_21 = arith.constant 0.000000e+00 : f32
    %58 = vector.broadcast %cst_21 : f32 to vector<16x1xf32>
    %59 = arith.addf %58, %54 : vector<16x1xf32>
    %60 = arith.addf %59, %57 : vector<16x1xf32>
    %cst_22 = arith.constant 0.000000e+00 : f32
    %61 = vector.broadcast %cst_22 : f32 to vector<16x1xf32>
    %62 = arith.addf %61, %27 : vector<16x1xf32>
    %63 = arith.addf %62, %38 : vector<16x1xf32>
    %cst_23 = arith.constant 0.000000e+00 : f32
    %64 = vector.broadcast %cst_23 : f32 to vector<16x1xf32>
    %65 = arith.cmpf ogt, %63, %64 : vector<16x1xf32>
    %cst_24 = arith.constant 1.000000e-30 : f32
    %66 = vector.broadcast %cst_24 : f32 to vector<16x1xf32>
    %67 = arith.maximumf %60, %66 : vector<16x1xf32>
    %cst_25 = arith.constant 1.000000e+00 : f32
    %68 = vector.broadcast %cst_25 : f32 to vector<16x1xf32>
    %69 = arith.divf %68, %67 : vector<16x1xf32>
    %cst_26 = arith.constant 0.000000e+00 : f32
    %70 = vector.broadcast %cst_26 : f32 to vector<16x1xf32>
    %71 = arith.select %65, %69, %70 : vector<16x1xi1>, vector<16x1xf32>
    %72 = vector.broadcast %54 : vector<16x1xf32> to vector<16x32xf32>
    %73 = arith.mulf %72, %24 : vector<16x32xf32>
    %cst_27 = arith.constant 0.000000e+00 : f32
    %74 = vector.broadcast %cst_27 : f32 to vector<16x32xf32>
    %75 = arith.addf %74, %73 : vector<16x32xf32>
    %76 = vector.broadcast %57 : vector<16x1xf32> to vector<16x32xf32>
    %77 = arith.mulf %76, %35 : vector<16x32xf32>
    %78 = arith.addf %75, %77 : vector<16x32xf32>
    %79 = vector.broadcast %71 : vector<16x1xf32> to vector<16x32xf32>
    %80 = arith.mulf %78, %79 : vector<16x32xf32>
    %81 = vector.extract_strided_slice %3 {offsets = [0, 0], sizes = [16, 96], strides = [1, 1]} : vector<16x128xf32> to vector<16x96xf32>
    %c0_28 = arith.constant 0 : index
    %c0_29 = arith.constant 0 : index
    %82 = vector.load %arg8[%c0_28, %c0_29] : memref<32x96xf32, #tpu.memory_space<vmem>>, vector<32x96xf32>
    %cst_30 = arith.constant dense<0.000000e+00> : vector<16x96xf32>
    %83 = tpu.matmul %80, %82, %cst_30 {dimension_numbers = #tpu.dot_dimension_numbers<[1], [0], [0], [1], [0, 0, 1, 1], [], []>} : vector<16x32xf32>, vector<32x96xf32>, vector<16x96xf32> -> vector<16x96xf32>
    %84 = arith.addf %81, %83 : vector<16x96xf32>
    %85 = vector.extract_strided_slice %84 {offsets = [0, 0], sizes = [16, 32], strides = [1, 1]} : vector<16x96xf32> to vector<16x32xf32>
    %86 = arith.negf %85 : vector<16x32xf32>
    %87 = math.exp %86 : vector<16x32xf32>
    %cst_31 = arith.constant 1.000000e+00 : f32
    %88 = vector.broadcast %cst_31 : f32 to vector<16x32xf32>
    %89 = arith.addf %88, %87 : vector<16x32xf32>
    %90 = arith.divf %88, %89 : vector<16x32xf32>
    %91 = vector.extract_strided_slice %84 {offsets = [0, 32], sizes = [16, 32], strides = [1, 1]} : vector<16x96xf32> to vector<16x32xf32>
    %92 = arith.negf %91 : vector<16x32xf32>
    %93 = math.exp %92 : vector<16x32xf32>
    %cst_32 = arith.constant 1.000000e+00 : f32
    %94 = vector.broadcast %cst_32 : f32 to vector<16x32xf32>
    %95 = arith.addf %94, %93 : vector<16x32xf32>
    %96 = arith.divf %94, %95 : vector<16x32xf32>
    %97 = vector.extract_strided_slice %84 {offsets = [0, 64], sizes = [16, 32], strides = [1, 1]} : vector<16x96xf32> to vector<16x32xf32>
    %98 = math.tanh %97 : vector<16x32xf32>
    %99 = arith.mulf %90, %98 : vector<16x32xf32>
    %100 = arith.addf %99, %50 : vector<16x32xf32>
    %101 = math.tanh %100 : vector<16x32xf32>
    %102 = arith.mulf %96, %101 : vector<16x32xf32>
    %c0_33 = arith.constant 0 : index
    %c0_34 = arith.constant 0 : index
    %103 = vector.load %arg4[%c0_33, %c0_34] : memref<16x1xi32, #tpu.memory_space<vmem>>, vector<16x1xi32>
    %104 = vector.broadcast %arg0 : i32 to vector<16x1xi32>
    %105 = arith.cmpi eq, %103, %104 : vector<16x1xi32>
    %106 = tpu.concatenate %102, %100 in 1 : vector<16x32xf32>, vector<16x32xf32> -> vector<16x64xf32>
    %107 = vector.shape_cast %105 : vector<16x1xi1> to vector<16x1xi1>
    %108 = vector.broadcast %107 : vector<16x1xi1> to vector<16x64xi1>
    %109 = arith.select %108, %106, %4 : vector<16x64xi1>, vector<16x64xf32>
    %c0_35 = arith.constant 0 : index
    %c0_36 = arith.constant 0 : index
    %110 = vector.load %arg13[%c0_35, %c0_36] : memref<16x64xf32, #tpu.memory_space<vmem>>, vector<16x64xf32>
    tpu.vector_store %arg13[%c0_35, %c0_36], %109 {strides = array<i32>} : memref<16x64xf32, #tpu.memory_space<vmem>>, vector<16x64xf32>,
    %c2_i32 = arith.constant 2 : i32
    %111 = arith.cmpi eq, %arg0, %c2_i32 : i32
    %112 = arith.extui %111 : i1 to i32
    %c0_i32_37 = arith.constant 0 : i32
    %113 = arith.cmpi ne, %112, %c0_i32_37 : i32
    scf.if %113 {
      %c0_38 = arith.constant 0 : index
      %c0_39 = arith.constant 0 : index
      %114 = vector.load %arg5[%c0_38, %c0_39] : memref<2x16xf32, #tpu.memory_space<vmem>>, vector<2x16xf32>
      %115 = vector.extract_strided_slice %109 {offsets = [0, 0], sizes = [16, 32], strides = [1, 1]} : vector<16x64xf32> to vector<16x32xf32>
      %cst_40 = arith.constant dense<0.000000e+00> : vector<2x32xf32>
      %116 = tpu.matmul %114, %115, %cst_40 {dimension_numbers = #tpu.dot_dimension_numbers<[1], [0], [0], [1], [0, 0, 1, 1], [], []>} : vector<2x16xf32>, vector<16x32xf32>, vector<2x32xf32> -> vector<2x32xf32>
      %c0_41 = arith.constant 0 : index
      %c0_42 = arith.constant 0 : index
      %117 = vector.load %arg12[%c0_41, %c0_42] : memref<2x32xf32, #tpu.memory_space<vmem>>, vector<2x32xf32>
      tpu.vector_store %arg12[%c0_41, %c0_42], %116 {strides = array<i32>} : memref<2x32xf32, #tpu.memory_space<vmem>>, vector<2x32xf32>,
    } else {
    }
    return
  }
  func.func @transform_0(%arg0: i32) -> (i32, i32) {
    %c0_i32 = arith.constant 0 : i32
    %c0_i32_0 = arith.constant 0 : i32
    %c0_i32_1 = arith.constant 0 : i32
    return %c0_i32, %c0_i32_0 : i32, i32
  }
  func.func @transform_1(%arg0: i32) -> (i32, i32) {
    %c0_i32 = arith.constant 0 : i32
    %c0_i32_0 = arith.constant 0 : i32
    %c0_i32_1 = arith.constant 0 : i32
    return %c0_i32, %c0_i32_0 : i32, i32
  }
  func.func @transform_2(%arg0: i32) -> (i32, i32) {
    %c0_i32 = arith.constant 0 : i32
    %c0_i32_0 = arith.constant 0 : i32
    %c0_i32_1 = arith.constant 0 : i32
    return %c0_i32, %c0_i32_0 : i32, i32
  }
  func.func @transform_3(%arg0: i32) -> (i32, i32) {
    %c0_i32 = arith.constant 0 : i32
    %c0_i32_0 = arith.constant 0 : i32
    %c0_i32_1 = arith.constant 0 : i32
    return %c0_i32, %c0_i32_0 : i32, i32
  }
  func.func @transform_4(%arg0: i32) -> (i32, i32) {
    %c0_i32 = arith.constant 0 : i32
    %c0_i32_0 = arith.constant 0 : i32
    %c0_i32_1 = arith.constant 0 : i32
    return %c0_i32, %c0_i32_0 : i32, i32
  }
  func.func @transform_5(%arg0: i32) -> (i32, i32) {
    %c0_i32 = arith.constant 0 : i32
    %c0_i32_0 = arith.constant 0 : i32
    %c0_i32_1 = arith.constant 0 : i32
    return %c0_i32, %c0_i32_0 : i32, i32
  }
  func.func @transform_6(%arg0: i32) -> (i32, i32) {
    %c0_i32 = arith.constant 0 : i32
    %c0_i32_0 = arith.constant 0 : i32
    %c0_i32_1 = arith.constant 0 : i32
    return %c0_i32, %c0_i32_0 : i32, i32
  }
  func.func @transform_7(%arg0: i32) -> (i32, i32) {
    %c0_i32 = arith.constant 0 : i32
    %c0_i32_0 = arith.constant 0 : i32
    %c0_i32_1 = arith.constant 0 : i32
    return %c0_i32, %c0_i32_0 : i32, i32
  }
  func.func @transform_8(%arg0: i32) -> (i32, i32) {
    %c0_i32 = arith.constant 0 : i32
    %c0_i32_0 = arith.constant 0 : i32
    %c0_i32_1 = arith.constant 0 : i32
    return %c0_i32, %c0_i32_0 : i32, i32
  }
  func.func @transform_9(%arg0: i32) -> (i32, i32) {
    %c0_i32 = arith.constant 0 : i32
    %c0_i32_0 = arith.constant 0 : i32
    %c0_i32_1 = arith.constant 0 : i32
    return %c0_i32, %c0_i32_0 : i32, i32
  }
  func.func @transform_10(%arg0: i32) -> (i32, i32) {
    %c0_i32 = arith.constant 0 : i32
    %c0_i32_0 = arith.constant 0 : i32
    %c0_i32_1 = arith.constant 0 : i32
    return %c0_i32, %c0_i32_0 : i32, i32
  }
  func.func @transform_11(%arg0: i32) -> (i32, i32) {
    %c0_i32 = arith.constant 0 : i32
    %c0_i32_0 = arith.constant 0 : i32
    %c0_i32_1 = arith.constant 0 : i32
    return %c0_i32, %c0_i32_0 : i32, i32
  }
}

</mosaic_0001>

<bundles_post_ra>
// kernel: tpu_custom_call.1
= control target key start
LH: loop header
LB: loop body
LE: loop exit
PB: predicated region body
PF: predicated region fallthrough
CT: control target
= control target key end

     0   :  { %s1430_s0 = inlined_call_operand.vmem [shape: f32[16,16], index: 0, kind: input, shape index: {}]   ;;  %s1431_s1 = inlined_call_operand.vmem [shape: f32[32,16], index: 1, kind: input, shape index: {}]   ;;  %s1432_s2 = inlined_call_operand.vmem [shape: f32[32,1], index: 2, kind: input, shape index: {}]   ;;  %s1433_s3 = inlined_call_operand.vmem [shape: s32[16,1], index: 3, kind: input, shape index: {}]   ;;  %s1434_s4 = inlined_call_operand.vmem [shape: f32[2,16], index: 4, kind: input, shape index: {}]   ;;  %s1435_s5 = inlined_call_operand.hbm [shape: f32[16,128], index: 5, kind: input, shape index: {}]   ;;  %s1436_s6 = inlined_call_operand.vmem [shape: f32[1,128], index: 6, kind: input, shape index: {}]   ;;  %s1437_s7 = inlined_call_operand.vmem [shape: f32[32,96], index: 7, kind: input, shape index: {}]   ;;  %s1438_s8 = inlined_call_operand.vmem [shape: f32[32,32], index: 8, kind: input, shape index: {}]   ;;  %s1439_s9 = inlined_call_operand.vmem [shape: f32[1,32], index: 9, kind: input, shape index: {}]   ;;  %s1440_s10 = inlined_call_operand.<no memory space> [shape: f32[1,1], index: 10, kind: input, shape index: {}]   ;;  %s1441_s11 = inlined_call_operand.hbm [shape: f32[2,32], index: 11, kind: output, shape index: {}]  }
   0x1   :  { %v16_v0 = vstv %s1440_s10 }
   0x2   :  { %17 = vst [vmem:[#allocation4] sm:$0x1] %v16_v0 }
   0x3   :  { %18 = vsyncpa [#allocation6], 0 }
   0x4   :  { %19 = vsyncpa [#allocation7], 0  ;;  %s1247_s19 = smov 0  }
   0x5 LB: > { %s308_s22 = sshll.u32 %s1435_s5, 4  ;;  %s1256_s23 = sadd.s32 4294967295, %s1173_s19   ;;  %s1173_s19 = sphi %s1247_s19, %s25_s19   ;;  %s309_s22 = int_to_ptr.hbm [resolvable:$true] %s308_s22 }
   0x6   : > { %p981_p0 = scmp.ge.s32.totalorder %s1173_s19, 1  ;;  %p282_p1 = scmp.lt.s32.totalorder %s1173_s19, 4 }
   0x7   : > { %p982_p2 = scmp.ne.s32.totalorder %s1256_s23, 0  ;;  %p1030_p3 = scmp.eq.s32.totalorder %s1256_s23, 0 }
   0x8   : > { %p283_p4 = pnand %p981_p0, %p282_p1  ;;  %s1175_s10 = smov [#allocation5]  }
   0x9   : > { %s310_s24 = sshll.u32 %s1175_s10, 4  ;;  %s1176_s25 = smov 128   ;;  %s311_s24 = int_to_ptr.vmem [resolvable:$true] %s310_s24 }
   0xa   : > { %p1026_p5 = pneg %p283_p4  ;;  %s1177_s26 = smov 8  }
   0xb   : > { %341 = sbr.rel (%p283_p4) target bundleno = 1210 (0x4ba), region = 64 }
   0xc   : > { %p1027_p6 = pnand %p1030_p3, %p1026_p5 }
   0xe   : > { %1029 = dma.hbm_to_vmem [thread:$0]  (!%p1027_p6), %s309_s22, 256, %s311_s24, [#allocation6], %s1176_s25, %s1176_s25, %s1177_s26  }
  0x10   : > { %1164 = dma.done.wait (%p1030_p3), [#allocation6], 256  }
  0x11   : > { %1166 = vsyncadd (%p1030_p3), [#allocation6], 4294967040  ;;  %375 = sbr.rel (%p982_p2) target bundleno = 156 (0x9c), region = 72 }
  0x16   : > { %vm376_vm0 = vcmask 523264   ;;  %v382_v1 = vld [vmem:[#allocation5 + $0x8] sm:$0xff]  ;;  %v381_v2 = vld [vmem:[#allocation5] sm:$0xff]  ;;  %v1178_v3 = vmov 0.0   ;;  %vm387_vm1 = vcmask 130048  }
  0x17   : > { %377 = vst.msk [vmem:[#allocation2] sm:$0xff] %vm376_vm0, %v1178_v3  ;;  %408 = vmatpush.msra.mxu0 %v382_v1  ;;  %1010 = vmatpush.msra.mxu1 %v382_v1  ;;  %v379_v4 = vld [vmem:[%s1430_s0] sm:$0xff]  ;;  %v380_v5 = vld [vmem:[%s1430_s0 + $0x8] sm:$0xff] }
  0x18   : > { %378 = vst.msk [vmem:[#allocation2 + $0x8] sm:$0xff] %vm376_vm0, %v1178_v3  ;;  %v1051_v6 = vld [vmem:[%s1436_s6] ss:$0 sm:$0xff] }
  0x19   : > { %409 = vmatpush.msra.mxu0 %v381_v2  ;;  %1011 = vmatpush.msra.mxu1 %v381_v2 }
  0x1a   : > { %986 = vmatmul.msk.f32.vlgmr.msra.gmra.mxu0 %vm387_vm1, %v379_v4  ;;  %987 = vmatmul.msk.f32.vlgmr.msra.gmra.mxu1 %vm387_vm1, %v380_v5 }
  0x97   : > { %v411_v7 = vpop.f32.mrf.mxu0  ;;  %v414_v8 = vpop.f32.mrf.mxu1 }
  0x98   : > { %v412_v9 = vadd.f32 %v1051_v6, %v411_v7  ;;  %v415_v10 = vadd.f32 %v1051_v6, %v414_v8 }
  0x9a   : > { %417 = vst [vmem:[#allocation3] sm:$0xff] %v412_v9 }
  0x9b   : > { %418 = vst [vmem:[#allocation3 + $0x8] sm:$0xff] %v415_v10 }
  0x9c PF: > { %v1273_v11 = vld [vmem:[#allocation2 + $0x8] sm:$0xff]  ;;  %v1275_v12 = vld [vmem:[#allocation2] sm:$0xff]  ;;  %vm427_vm2 = vcmask 130048   ;;  %v426_v14 = vld [vmem:[%s1431_s1 + $0x18] sm:$0xff]  ;;  %vm473_vm3 = vcmask 261120   ;;  %v1179_v34 = vmov 0  }
  0x9d   : > { %454 = vmatpush.msra.mxu0 %v1273_v11  ;;  %v423_v13 = vld [vmem:[%s1431_s1] sm:$0xff]  ;;  %1012 = vmatpush.msra.mxu1 %v1273_v11  ;;  %v472_v15 = vld [vmem:[%s1438_s8 + $0x18] sm:$0xff]  ;;  %v471_v16 = vld [vmem:[%s1438_s8 + $0x10] sm:$0xff]  ;;  %s1180_s10 = smov 96   ;;  %s1181_s24 = smov 32  }
  0x9e   : > { %1014 = vmatpush.msra.mxu3 %v472_v15  ;;  %v470_v17 = vld [vmem:[%s1438_s8 + $0x8] sm:$0xff]  ;;  %v425_v19 = vld [vmem:[%s1431_s1 + $0x10] sm:$0xff]  ;;  %v469_v20 = vld [vmem:[%s1438_s8] sm:$0xff]  ;;  %1054 = vset.pattern.permute.xlu1 %v1179_v34  ;;  %s1182_s14 = smov 64   ;;  %p1004_p7 = scmp.ne.s32.totalorder %s1256_s23, 2 }
  0x9f   : > { %455 = vmatpush.msra.mxu0 %v1275_v12  ;;  %1013 = vmatpush.msra.mxu1 %v1275_v12  ;;  %v424_v18 = vld [vmem:[%s1431_s1 + $0x8] sm:$0xff]  ;;  %v1055_v21 = vld [vmem:[%s1439_s9] ss:$0 sm:$0xff]  ;;  %v546_v40 = vld [vmem:[%s1432_s2 + $0x18] sm:$0xff] }
  0xa0   : > { %988 = vmatmul.msk.f32.vlgmr.msra.gmra.mxu0 %vm427_vm2, %v423_v13  ;;  %991 = vmatmul.msk.f32.vlgmr.msra.gmra.mxu1 %vm427_vm2, %v426_v14  ;;  %v1056_v37 = vld [vmem:[#allocation4] ss:$0 sm:$0xff]  ;;  %v544_v39 = vld [vmem:[%s1432_s2 + $0x8] sm:$0xff]  ;;  %v545_v41 = vld [vmem:[%s1432_s2 + $0x10] sm:$0xff]  ;;  %vm550_vm6 = vcmp.gt.f32.partialorder %v546_v40, 0.0 }
  0xa1   : > { %498 = vmatpush.msrb.mxu1 %v472_v15  ;;  %1015 = vmatpush.msra.mxu3 %v471_v16  ;;  %v543_v38 = vld [vmem:[%s1432_s2] sm:$0xff]  ;;  %vm548_vm5 = vcmp.gt.f32.partialorder %v544_v39, 0.0  ;;  %vm549_vm7 = vcmp.gt.f32.partialorder %v545_v41, 0.0 }
  0xa2   : > { %1052 = vset.pattern.permute.xlu2 %v1179_v34  ;;  %1053 = vset.pattern.permute.xlu0 %v1179_v34  ;;  %vm547_vm4 = vcmp.gt.f32.partialorder %v543_v38, 0.0 }
  0xa3   : > { %499 = vmatpush.msrb.mxu1 %v471_v16  ;;  %1016 = vmatpush.msra.mxu3 %v470_v17 }
  0xa5   : > { %500 = vmatpush.msrb.mxu1 %v470_v17  ;;  %1017 = vmatpush.msra.mxu3 %v469_v20  ;;  %v687_v17 = vadd.f32 %v545_v41, %v543_v38 }
  0xa7   : > { %501 = vmatpush.msrb.mxu1 %v469_v20  ;;  %vm689_vm13 = vcmp.gt.f32.partialorder %v687_v17, 0.0 }
  0xa8   : > { %989 = vmatmul.msk.f32.gmra.mxu0 %vm427_vm2, %v424_v18 }
  0xb0   : > { %990 = vmatmul.msk.f32.gmra.mxu0 %vm427_vm2, %v425_v19 }
 0x11d   : > { %v1312_v22 = vpop.f32.mrf.mxu0  ;;  %v1323_v27 = vpop.f32.mrf.mxu1 }
 0x11e   : > { %992 = vmatmul.msk.f32.vlgmr.msrb.gmra.mxu1 %vm473_vm3, %v1312_v22  ;;  %v519_v23 = vmul.f32 %v1055_v21, %v1312_v22  ;;  %v522_v29 = vmul.f32 %v1055_v21, %v1323_v27 }
 0x120   : > { %v523_v24 = vsel %vm473_vm3, %v519_v23, 0.0  ;;  %v532_v31 = vsel %vm473_vm3, %v522_v29, 0.0  ;;  %v688_v23 = vadd.f32 %v546_v40, %v544_v39 }
 0x121   : > { %524 = vadd.xlane.f32.xlu0 %v523_v24 }
 0x122   : > { %vm690_vm1 = vcmp.gt.f32.partialorder %v688_v23, 0.0 }
 0x125   : > { %v1318_v25 = vpop.f32.mrf.mxu0 }
 0x126   : > { %993 = vmatmul.msk.f32.vlgmr.msra.gmra.mxu3 %vm473_vm3, %v1318_v25  ;;  %v520_v26 = vmul.f32 %v1055_v21, %v1318_v25 }
 0x128   : > { %v526_v28 = vsel %vm473_vm3, %v520_v26, 0.0 }
 0x129   : > { %527 = vadd.xlane.f32.xlu1 %v526_v28 }
 0x12d   : > { %v1327_v30 = vpop.f32.mrf.mxu0 }
 0x12e   : > { %994 = vmatmul.msk.f32.gmra.mxu3 %vm473_vm3, %v1327_v30  ;;  %v521_v32 = vmul.f32 %v1055_v21, %v1327_v30 }
 0x130   : > { %v529_v33 = vsel %vm473_vm3, %v521_v32, 0.0 }
 0x131   : > { %533 = vadd.xlane.f32.xlu1 %v532_v31  ;;  %530 = vadd.xlane.f32.xlu0 %v529_v33 }
 0x136   : > { %995 = vmatmul.msk.f32.gmra.mxu3 %vm473_vm3, %v1323_v27 }
 0x194   : > { %v525_v35 = vpop.xlane.xlu0 %524 }
 0x195   : > { %v539_v42 = vadd.f32 %v1056_v37, %v525_v35 }
 0x197   : > { %v551_v48 = vsel %vm547_vm4, %v539_v42, -1e+30  ;;  %v420_v42 = vld [vmem:[#allocation3 + $0x8] sm:$0xff] }
 0x19c   : > { %v528_v36 = vpop.xlane.xlu1 %527 }
 0x19d   : > { %v540_v43 = vadd.f32 %v1056_v37, %v528_v36 }
 0x19f   : > { %v552_v49 = vsel %vm548_vm5, %v540_v43, -1e+30  ;;  %v768_v43 = vld [vmem:[%s1437_s7 + $0x18] sm:$0xff] }
 0x1a0   : > { %787 = vmatpush.msra.mxu2 %v768_v43 }
 0x1a4   : > { %v534_v44 = vpop.xlane.xlu1 %533  ;;  %v531_v45 = vpop.xlane.xlu0 %530 }
 0x1a5   : > { %v542_v46 = vadd.f32 %v1056_v37, %v534_v44  ;;  %v541_v47 = vadd.f32 %v1056_v37, %v531_v45  ;;  %v767_v44 = vld [vmem:[%s1437_s7 + $0x10] sm:$0xff]  ;;  %v766_v45 = vld [vmem:[%s1437_s7 + $0x8] sm:$0xff] }
 0x1a6   : > { %788 = vmatpush.msra.mxu2 %v767_v44 }
 0x1a7   : > { %v554_v50 = vsel %vm550_vm6, %v542_v46, -1e+30  ;;  %v553_v51 = vsel %vm549_vm7, %v541_v47, -1e+30  ;;  %v765_v46 = vld [vmem:[%s1437_s7] sm:$0xff] }
 0x1a8   : > { %v664_v52 = vmax.f32 %v552_v49, %v554_v50  ;;  %v663_v53 = vmax.f32 %v551_v48, %v553_v51  ;;  %789 = vmatpush.msra.mxu2 %v766_v45 }
 0x1aa   : > { %v666_v54 = vsub.f32 %v552_v49, %v664_v52  ;;  %v674_v55 = vsub.f32 %v554_v50, %v664_v52  ;;  %v665_v56 = vsub.f32 %v551_v48, %v663_v53  ;;  %v673_v57 = vsub.f32 %v553_v51, %v663_v53  ;;  %790 = vmatpush.msra.mxu2 %v765_v46 }
 0x1ac   : > { %v669_v58 = vmul.f32 1.442695, %v666_v54  ;;  %v677_v59 = vmul.f32 1.442695, %v674_v55  ;;  %v667_v60 = vmul.f32 1.442695, %v665_v56 }
 0x1ad   : > { %v675_v61 = vmul.f32 1.442695, %v673_v57 }
 0x1ae   : > { %1057 = vpow2.f32 %v669_v58 }
 0x1af   : > { %1059 = vpow2.f32 %v677_v59 }
 0x1b0   : > { %1061 = vpow2.f32 %v667_v60 }
 0x1b1   : > { %1063 = vpow2.f32 %v675_v61 }
 0x1b4   : > { %v1058_v62 = vpop.eup %1057 }
 0x1b5   : > { %v1060_v63 = vpop.eup %1059  ;;  %v672_v0 = vmul.f32 %v1058_v62, %v544_v39 }
 0x1b6   : > { %v1062_v1 = vpop.eup %1061  ;;  %v680_v2 = vmul.f32 %v1060_v63, %v546_v40 }
 0x1b7   : > { %v1064_v3 = vpop.eup %1063  ;;  %732 = vperm.xlu1 %1054, %v672_v0   ;;  %v671_v4 = vmul.f32 %v1062_v1, %v543_v38  ;;  %v503_v1 = vpop.f32.mrf.mxu1 }
 0x1b8   : > { %v679_v5 = vmul.f32 %v1064_v3, %v545_v41  ;;  %v684_v6 = vadd.f32 %v680_v2, %v672_v0  ;;  %v419_v41 = vld [vmem:[#allocation3] sm:$0xff]  ;;  %v506_v0 = vpop.f32.mrf.mxu3 }
 0x1b9   : > { %727 = vperm.xlu2 %1052, %v671_v4  }
 0x1ba   : > { %v683_v7 = vadd.f32 %v679_v5, %v671_v4  ;;  %v692_v8 = vmax.f32 %v684_v6, 1e-30 }
 0x1bc   : > { %v691_v9 = vmax.f32 %v683_v7, 1e-30  ;;  %1065 = vrcp.f32 %v692_v8  ;;  %v719_v20 = vand.u32 2147483648, %v692_v8  ;;  %vm713_vm9 = vweird.f32 %v692_v8 }
 0x1bd   : > { %v717_v24 = vand.u32 2147483647, %v692_v8 }
 0x1be   : > { %1067 = vrcp.f32 %v691_v9  ;;  %v704_v21 = vand.u32 2147483648, %v691_v9  ;;  %v702_v28 = vand.u32 2147483647, %v691_v9  ;;  %vm698_vm12 = vweird.f32 %v691_v9 }
 0x1bf   : > { %643 = vrot.lane.b32.xlu1 %v1312_v22, %s1180_s10  ;;  %v720_v33 = vor.u32 1.1754944e-38, %v719_v20  ;;  %vm718_vm15 = vcmp.eq.f32.partialorder %v717_v24, 8.507059e+37 }
 0x1c0   : > { %v705_v35 = vor.u32 1.1754944e-38, %v704_v21  ;;  %vm703_vm0 = vcmp.eq.f32.partialorder %v702_v28, 8.507059e+37 }
 0x1c1   : > { %741 = vperm.xlu2 %1052, %v679_v5  }
 0x1c2   : > { %v1066_v10 = vpop.eup %1065 }
 0x1c3   : > { %v709_v13 = vmul.f32 %v1066_v10, %v692_v8  ;;  %vm714_vm8 = vweird.f32 %v1066_v10 }
 0x1c4   : > { %v1068_v14 = vpop.eup %1067  ;;  %vm715_vm11 = vmor %vm713_vm9, %vm714_vm8 }
 0x1c5   : > { %v694_v15 = vmul.f32 %v1068_v14, %v691_v9  ;;  %v710_v16 = vsub.f32 1.0, %v709_v13  ;;  %vm699_vm10 = vweird.f32 %v1068_v14 }
 0x1c6   : > { %vm700_vm14 = vmor %vm698_vm12, %vm699_vm10 }
 0x1c7   : > { %653 = vrot.lane.b32.xlu1 %v1327_v30, %s1180_s10  ;;  %v695_v18 = vsub.f32 1.0, %v694_v15  ;;  %v711_v19 = vmul.f32 %v1066_v10, %v710_v16 }
 0x1c9   : > { %746 = vperm.xlu2 %1052, %v680_v2   ;;  %v696_v26 = vmul.f32 %v1068_v14, %v695_v18  ;;  %v712_v29 = vadd.f32 %v1066_v10, %v711_v19  ;;  %v509_v2 = vpop.f32.mrf.mxu3 }
 0x1cb   : > { %v697_v31 = vadd.f32 %v1068_v14, %v696_v26  ;;  %v716_v32 = vsel %vm715_vm11, %v1066_v10, %v712_v29 }
 0x1cc   : > { %v721_v37 = vsel %vm718_vm15, %v720_v33, %v716_v32 }
 0x1cd   : > { %v701_v36 = vsel %vm700_vm14, %v1068_v14, %v697_v31  ;;  %v724_v40 = vsel %vm690_vm1, %v721_v37, 0.0 }
 0x1ce   : > { %v706_v38 = vsel %vm703_vm0, %v705_v35, %v701_v36 }
 0x1cf   : > { %v723_v39 = vsel %vm689_vm13, %v706_v38, 0.0 }
 0x1d0   : > { %755 = vperm.xlu0 %1053, %v723_v39  }
 0x1d1   : > { %760 = vperm.xlu2 %1052, %v724_v40   ;;  %v512_v21 = vpop.f32.mrf.mxu3 }
 0x1d8   : > { %655 = vrot.lane.b32.xlu0 %v1323_v27, %s1180_s10 }
 0x1d9   : > { %557 = vrot.lane.b32.xlu2 %v419_v41, %s1181_s24 }
 0x1e1   : > { %559 = vrot.lane.b32.xlu2 %v420_v42, %s1181_s24 }
 0x1e9   : > { %645 = vrot.lane.b32.xlu2 %v1318_v25, %s1180_s10 }
 0x213   : > { %v728_v47 = vpop.permute.xlu2 %727 }
 0x214   : > { %v735_v50 = vmul.f32 %v728_v47, %v1312_v22 }
 0x21b   : > { %v742_v48 = vpop.permute.xlu2 %741 }
 0x21c   : > { %v749_v49 = vmul.f32 %v742_v48, %v1327_v30 }
 0x21e   : > { %v751_v53 = vadd.f32 %v749_v49, %v735_v50 }
 0x223   : > { %v747_v51 = vpop.permute.xlu2 %746 }
 0x224   : > { %v750_v57 = vmul.f32 %v747_v51, %v1323_v27 }
 0x229   : > { %v733_v52 = vpop.permute.xlu1 %732 }
 0x22a   : > { %v736_v55 = vmul.f32 %v733_v52, %v1318_v25 }
 0x22b   : > { %v761_v59 = vpop.permute.xlu2 %760 }
 0x22c   : > { %v752_v58 = vadd.f32 %v750_v57, %v736_v55 }
 0x22e   : > { %v764_v60 = vmul.f32 %v761_v59, %v752_v58 }
 0x231   : > { %v644_v38 = vpop.permute.xlu1 %643 }
 0x233   : > { %v558_v27 = vpop.permute.xlu2 %557 }
 0x234   : > { %v563_v3 = vadd.f32 %v558_v27, %v503_v1  ;;  %v603_v4 = vadd.f32 %v558_v27, %v509_v2 }
 0x236   : > { %v996_v5 = vmul.f32 -1.442695, %v563_v3  ;;  %v998_v6 = vmul.f32 -1.442695, %v603_v4 }
 0x23b   : > { %v560_v18 = vpop.permute.xlu2 %559 }
 0x23c   : > { %v564_v23 = vadd.f32 %v560_v18, %v506_v0  ;;  %v604_v24 = vadd.f32 %v560_v18, %v512_v21 }
 0x23e   : > { %v997_v31 = vmul.f32 -1.442695, %v564_v23  ;;  %v999_v32 = vmul.f32 -1.442695, %v604_v24 }
 0x242   : > { %v756_v54 = vpop.permute.xlu0 %755 }
 0x243   : > { %v763_v56 = vmul.f32 %v756_v54, %v751_v53  ;;  %v1389_v54 = vpop.permute.xlu2 %645 }
 0x245   : > { %1000 = vmatmul.msk.f32.vlgmr.msra.gmra.mxu2 %vm473_vm3, %v763_v56 }
 0x24d   : > { %1001 = vmatmul.msk.f32.gmra.mxu2 %vm473_vm3, %v764_v60 }
 0x2c8   : > { %v792_v61 = vpop.f32.mrf.mxu2 }
 0x2c9   : > { %v798_v30 = vadd.f32 %v792_v61, %v419_v41 }
 0x2cb   : > { %1069 = vtanh.f32 %v798_v30  ;;  %v1002_v7 = vmul.f32 -1.442695, %v798_v30  ;;  %v654_v30 = vpop.permute.xlu1 %653 }
 0x2d0   : > { %v795_v22 = vpop.f32.mrf.mxu2 }
 0x2d1   : > { %v1070_v62 = vpop.eup %1069  ;;  %v799_v63 = vadd.f32 %v795_v22, %v420_v42 }
 0x2d2   : > { %842 = vrot.lane.b32.xlu2 %v1070_v62, %s1182_s14 }
 0x2d3   : > { %1071 = vtanh.f32 %v799_v63  ;;  %v1003_v41 = vmul.f32 -1.442695, %v799_v63 }
 0x2d4   : > { %1073 = vpow2.f32 %v996_v5 }
 0x2d5   : > { %1075 = vpow2.f32 %v998_v6 }
 0x2d6   : > { %1077 = vpow2.f32 %v1002_v7 }
 0x2d9   : > { %v1072_v25 = vpop.eup %1071 }
 0x2da   : > { %844 = vrot.lane.b32.xlu1 %v1072_v25, %s1182_s14  ;;  %v1074_v8 = vpop.eup %1073 }
 0x2db   : > { %v1076_v9 = vpop.eup %1075  ;;  %v571_v10 = vadd.f32 1.0, %v1074_v8 }
 0x2dc   : > { %v611_v13 = vadd.f32 1.0, %v1076_v9  ;;  %v1078_v14 = vpop.eup %1077 }
 0x2dd   : > { %1079 = vrcp.f32 %v571_v10  ;;  %v1379_v15 = vadd.f32 1.0, %v1078_v14  ;;  %vm578_vm6 = vweird.f32 %v571_v10  ;;  %v582_v42 = vand.u32 2147483647, %v571_v10 }
 0x2de   : > { %1081 = vrcp.f32 %v611_v13  ;;  %v584_v43 = vand.u32 2147483648, %v571_v10  ;;  %v624_v44 = vand.u32 2147483648, %v611_v13  ;;  %vm618_vm8 = vweird.f32 %v611_v13 }
 0x2df   : > { %1083 = vrcp.f32 %v1379_v15  ;;  %v622_v46 = vand.u32 2147483647, %v611_v13  ;;  %vm583_vm10 = vcmp.eq.f32.partialorder %v582_v42, 8.507059e+37  ;;  %v819_v60 = vand.u32 2147483648, %v1379_v15 }
 0x2e0   : > { %1085 = vpow2.f32 %v997_v31  ;;  %v585_v52 = vor.u32 1.1754944e-38, %v584_v43  ;;  %v625_v53 = vor.u32 1.1754944e-38, %v624_v44  ;;  %vm813_vm13 = vweird.f32 %v1379_v15 }
 0x2e1   : > { %1087 = vpow2.f32 %v999_v32  ;;  %vm623_vm11 = vcmp.eq.f32.partialorder %v622_v46, 8.507059e+37  ;;  %v817_v61 = vand.u32 2147483647, %v1379_v15  ;;  %v820_v0 = vor.u32 1.1754944e-38, %v819_v60 }
 0x2e2   : > { %1089 = vpow2.f32 %v1003_v41  ;;  %v656_v41 = vpop.permute.xlu0 %655 }
 0x2e3   : > { %v1080_v16 = vpop.eup %1079  ;;  %vm818_vm15 = vcmp.eq.f32.partialorder %v817_v61, 8.507059e+37 }
 0x2e4   : > { %v1082_v17 = vpop.eup %1081  ;;  %v574_v19 = vmul.f32 %v1080_v16, %v571_v10  ;;  %vm579_vm4 = vweird.f32 %v1080_v16 }
 0x2e5   : > { %v614_v20 = vmul.f32 %v1082_v17, %v611_v13  ;;  %v1084_v26 = vpop.eup %1083  ;;  %vm619_vm5 = vweird.f32 %v1082_v17  ;;  %vm1383_vm7 = vmor %vm578_vm6, %vm579_vm4 }
 0x2e6   : > { %v575_v28 = vsub.f32 1.0, %v574_v19  ;;  %v809_v33 = vmul.f32 %v1084_v26, %v1379_v15  ;;  %v1086_v48 = vpop.eup %1085  ;;  %vm620_vm9 = vmor %vm618_vm8, %vm619_vm5  ;;  %vm814_vm12 = vweird.f32 %v1084_v26 }
 0x2e7   : > { %v615_v29 = vsub.f32 1.0, %v614_v20  ;;  %v1088_v49 = vpop.eup %1087  ;;  %v572_v55 = vadd.f32 1.0, %v1086_v48  ;;  %vm815_vm14 = vmor %vm813_vm13, %vm814_vm12 }
 0x2e8   : > { %v576_v35 = vmul.f32 %v1080_v16, %v575_v28  ;;  %v810_v37 = vsub.f32 1.0, %v809_v33  ;;  %v612_v59 = vadd.f32 1.0, %v1088_v49  ;;  %v1090_v22 = vpop.eup %1089 }
 0x2e9   : > { %v616_v36 = vmul.f32 %v1082_v17, %v615_v29  ;;  %1091 = vrcp.f32 %v572_v55  ;;  %v807_v27 = vadd.f32 1.0, %v1090_v22  ;;  %vm593_vm4 = vweird.f32 %v572_v55 }
 0x2ea   : > { %v577_v39 = vadd.f32 %v1080_v16, %v576_v35  ;;  %v811_v47 = vmul.f32 %v1084_v26, %v810_v37  ;;  %1093 = vrcp.f32 %v612_v59  ;;  %v599_v23 = vand.u32 2147483648, %v572_v55 }
 0x2eb   : > { %v617_v40 = vadd.f32 %v1082_v17, %v616_v36  ;;  %1095 = vrcp.f32 %v807_v27  ;;  %v639_v24 = vand.u32 2147483648, %v612_v59  ;;  %vm633_vm6 = vweird.f32 %v612_v59 }
 0x2ec   : > { %v581_v50 = vsel %vm1383_vm7, %v1080_v16, %v577_v39  ;;  %v812_v56 = vadd.f32 %v1084_v26, %v811_v47  ;;  %v637_v28 = vand.u32 2147483647, %v612_v59  ;;  %v600_v33 = vor.u32 1.1754944e-38, %v599_v23 }
 0x2ed   : > { %v621_v51 = vsel %vm620_vm9, %v1082_v17, %v617_v40  ;;  %v586_v57 = vsel %vm583_vm10, %v585_v52, %v581_v50  ;;  %v640_v35 = vor.u32 1.1754944e-38, %v639_v24  ;;  %v834_v39 = vand.u32 2147483648, %v807_v27  ;;  %v865_v52 = vld [vmem:[%s1433_s3 + $0x8] sm:$0xff] }
 0x2ee   : > { %v626_v58 = vsel %vm623_vm11, %v625_v53, %v621_v51  ;;  %v649_v62 = vmul.f32 %v644_v38, %v586_v57  ;;  %v816_v25 = vsel %vm815_vm14, %v1084_v26, %v812_v56  ;;  %v597_v26 = vand.u32 2147483647, %v572_v55 }
 0x2ef   : > { %v659_v63 = vmul.f32 %v654_v30, %v626_v58  ;;  %v1394_v2 = vsel %vm818_vm15, %v820_v0, %v816_v25  ;;  %v1092_v5 = vpop.eup %1091  ;;  %vm638_vm9 = vcmp.eq.f32.partialorder %v637_v28, 8.507059e+37  ;;  %vm828_vm11 = vweird.f32 %v807_v27 }
 0x2f0   : > { %v1094_v7 = vpop.eup %1093  ;;  %v589_v8 = vmul.f32 %v1092_v5, %v572_v55  ;;  %vm594_vm0 = vweird.f32 %v1092_v5  ;;  %vm598_vm8 = vcmp.eq.f32.partialorder %v597_v26, 8.507059e+37  ;;  %v832_v40 = vand.u32 2147483647, %v807_v27 }
 0x2f1   : > { %v661_v3 = vadd.f32 %v659_v63, %v649_v62  ;;  %v629_v9 = vmul.f32 %v1094_v7, %v612_v59  ;;  %v1096_v10 = vpop.eup %1095  ;;  %vm634_vm1 = vweird.f32 %v1094_v7  ;;  %vm595_vm5 = vmor %vm593_vm4, %vm594_vm0  ;;  %v835_v45 = vor.u32 1.1754944e-38, %v834_v39  ;;  %v864_v59 = vld [vmem:[%s1433_s3] sm:$0xff] }
 0x2f2   : > { %v590_v14 = vsub.f32 1.0, %v589_v8  ;;  %v824_v16 = vmul.f32 %v1096_v10, %v807_v27  ;;  %vm635_vm7 = vmor %vm633_vm6, %vm634_vm1  ;;  %vm829_vm10 = vweird.f32 %v1096_v10  ;;  %vm833_vm13 = vcmp.eq.f32.partialorder %v832_v40, 8.507059e+37 }
 0x2f3   : > { %v630_v15 = vsub.f32 1.0, %v629_v9  ;;  %vm830_vm12 = vmor %vm828_vm11, %vm829_vm10  ;;  %v866_v53 = vstv %s1256_s23  ;;  %vm899_vm0 = vcmask 523264  }
 0x2f4   : > { %v591_v17 = vmul.f32 %v1092_v5, %v590_v14  ;;  %v825_v19 = vsub.f32 1.0, %v824_v16  ;;  %vm868_vm14 = vcmp.eq.s32.totalorder %v865_v52, %v866_v53  ;;  %vm867_vm15 = vcmp.eq.s32.totalorder %v864_v59, %v866_v53 }
 0x2f5   : > { %v631_v18 = vmul.f32 %v1094_v7, %v630_v15  ;;  %v887_v60 = vsel %vm867_vm15, 1, %v1179_v34 }
 0x2f6   : > { %v592_v20 = vadd.f32 %v1092_v5, %v591_v17  ;;  %v826_v29 = vmul.f32 %v1096_v10, %v825_v19 }
 0x2f7   : > { %v632_v21 = vadd.f32 %v1094_v7, %v631_v18 }
 0x2f8   : > { %v596_v31 = vsel %vm595_vm5, %v1092_v5, %v592_v20  ;;  %v827_v36 = vadd.f32 %v1096_v10, %v826_v29 }
 0x2f9   : > { %v636_v32 = vsel %vm635_vm7, %v1094_v7, %v632_v21  ;;  %v601_v37 = vsel %vm598_vm8, %v600_v33, %v596_v31 }
 0x2fa   : > { %v641_v38 = vsel %vm638_vm9, %v640_v35, %v636_v32  ;;  %v650_v42 = vmul.f32 %v1389_v54, %v601_v37  ;;  %v831_v44 = vsel %vm830_vm12, %v1096_v10, %v827_v36  ;;  %v888_v54 = vsel %vm868_vm14, 1, %v1179_v34 }
 0x2fb   : > { %v660_v43 = vmul.f32 %v656_v41, %v641_v38  ;;  %v836_v47 = vsel %vm833_vm13, %v835_v45, %v831_v44 }
 0x2fd   : > { %v662_v48 = vadd.f32 %v660_v43, %v650_v42 }
 0x32c   : > { %v843_v1 = vpop.permute.xlu2 %842 }
 0x32d   : > { %v848_v4 = vmul.f32 %v843_v1, %v1394_v2 }
 0x32f   : > { %v850_v6 = vadd.f32 %v848_v4, %v661_v3 }
 0x331   : > { %1097 = vtanh.f32 %v850_v6 }
 0x337   : > { %v1098_v13 = vpop.eup %1097 }
 0x338   : > { %856 = vrot.lane.b32.xlu0 %v1098_v13, %s1181_s24 }
 0x34c   : > { %v845_v46 = vpop.permute.xlu1 %844 }
 0x34d   : > { %v849_v49 = vmul.f32 %v845_v46, %v836_v47 }
 0x34f   : > { %v851_v50 = vadd.f32 %v849_v49, %v662_v48 }
 0x351   : > { %1099 = vtanh.f32 %v851_v50 }
 0x357   : > { %v1100_v51 = vpop.eup %1099 }
 0x358   : > { %858 = vrot.lane.b32.xlu2 %v1100_v51, %s1181_s24 }
 0x360   : > { %879 = vrot.lane.b32.xlu2 %v850_v6, %s1181_s24 }
 0x368   : > { %893 = vperm.xlu2 %1052, %v888_v54  }
 0x3aa   : > { %v857_v55 = vpop.permute.xlu0 %856 }
 0x3ab   : > { %v862_v56 = vmul.f32 %v857_v55, %v1394_v2 }
 0x3ad   : > { %871 = vrot.lane.b32.xlu1 %v862_v56, %s1180_s10 }
 0x3b2   : > { %v859_v57 = vpop.permute.xlu2 %858 }
 0x3b3   : > { %v863_v58 = vmul.f32 %v859_v57, %v836_v47 }
 0x3b5   : > { %873 = vrot.lane.b32.xlu0 %v863_v58, %s1180_s10  ;;  %881 = vrot.lane.b32.xlu1 %v851_v50, %s1181_s24 }
 0x3ba   : > { %v880_v61 = vpop.permute.xlu2 %879 }
 0x3bd   : > { %890 = vperm.xlu0 %1053, %v887_v60  }
 0x3c2   : > { %v894_v22 = vpop.permute.xlu2 %893 }
 0x3c3   : > { %vm896_vm1 = vcmp.eq.s32.totalorder %v894_v22, 1 }
 0x41f   : > { %v872_v30 = vpop.permute.xlu1 %871 }
 0x420   : > { %v885_v1 = vsel %vm473_vm3, %v872_v30, %v880_v61 }
 0x427   : > { %v882_v62 = vpop.permute.xlu1 %881  ;;  %v874_v63 = vpop.permute.xlu0 %873 }
 0x428   : > { %v886_v25 = vsel %vm473_vm3, %v874_v63, %v882_v62 }
 0x429   : > { %v898_v0 = vsel %vm896_vm1, %v886_v25, %v1273_v11 }
 0x42a   : > { %901 = vst.msk [vmem:[#allocation2 + $0x8] sm:$0xff] %vm899_vm0, %v898_v0 }
 0x42e   : > { %905 = sbr.rel (%p1004_p7) target bundleno = 1205 (0x4b5), region = 76 }
 0x42f   : > { %v891_v27 = vpop.permute.xlu0 %890 }
 0x430   : > { %vm895_vm4 = vcmp.eq.s32.totalorder %v891_v27, 1 }
 0x431   : > { %v897_v2 = vsel %vm895_vm4, %v885_v1, %v1275_v12 }
 0x432   : > { %900 = vst.msk [vmem:[#allocation2] sm:$0xff] %vm899_vm0, %v897_v2 }
 0x433   : > { %924 = vmatpush.msra.mxu0 %v898_v0  ;;  %v906_v34 = vld [vmem:[%s1434_s4] sm:$0x3]  ;;  %vm930_vm5 = vcmask 254976  }
 0x435   : > { %925 = vmatpush.msra.mxu0 %v897_v2 }
 0x436   : > { %1005 = vmatmul.msk.f32.vlgmr.msra.gmra.mxu0 %vm427_vm2, %v906_v34 }
 0x4b3   : > { %v927_v11 = vpop.f32.mrf.mxu0 }
 0x4b4   : > { %931 = vst.msk [vmem:[#allocation8] sm:$0x3] %vm930_vm5, %v927_v11 }
 0x4b5 PF: > { %p1032_p8 = scmp.eq.s32.totalorder %s1256_s23, 2  ;;  %s1183_s22 = smov [#allocation8]  }
 0x4b6   : > { %s938_s10 = sshll.u32 %s1183_s22, 4  ;;  %s940_s26 = sshll.u32 %s1441_s11, 4  ;;  %s939_s10 = int_to_ptr.vmem [resolvable:$true] %s938_s10  ;;  %s941_s26 = int_to_ptr.hbm [resolvable:$true] %s940_s26 }
 0x4b7   : > { %1023 = dma.vmem_to_hbm [thread:$0]  (%p1032_p8), %s939_s10, 32, %s941_s26, [#allocation7]  }
 0x4b8   : > { %1168 = dma.done.wait (%p1032_p8), [#allocation7], 32  }
 0x4b9   : > { %1170 = vsyncadd (%p1032_p8), [#allocation7], 4294967264 }
 0x4ba PF: > { %s25_s19 = sadd.s32 1, %s1173_s19  }
 0x4bb   : > { %p22_p9 = scmp.ge.s32.totalorder %s25_s19, 5  }
 0x4bd   :  { %24 = sbr.rel (!%p22_p9) target bundleno = 5 (0x5), region = 101 }
 0x4c2   :  { %954 = vsyncpa [#allocation6], 1 }
 0x4c3   :  { %956 = vsyncpa [#allocation6 + $0x1], 1 }
 0x4c4   :  { %957 = vsyncpa [#allocation7], 1 }
 0x4c5   :  { %959 = vsyncpa [#allocation7 + $0x1], 1 }

</bundles_post_ra>
